<compile_context>
chip_gen: v6e
topology: v6e:2x2x1
jax: 0.10.0
libtpu: 0.0.40
codegen_flags: <defaults>
</compile_context>

<pallas_src>
import functools

import jax
import jax.numpy as jnp
from jax.experimental import pallas as pl
from jax.experimental.pallas import tpu as pltpu


C_PAD = 128    # lane width: pad all channel dims to one full vreg lane row
N_ALIGN = 8    # sublane alignment for the node dimension


def _round_up(x, m):
    return ((x + m - 1) // m) * m


# ----------------------------------------------------------------------------
# Fused Pallas kernel: all GraphConv layers (+ interleaved ReLU) in one call.
#   a_ref : (Np, Np)              bf16   dense weighted adjacency, A[tgt, src] = w
#   x_ref : (Np, C_PAD)           f32    zero-padded node features
#   w_ref : (L, 2*C_PAD, C_PAD)   bf16   per-layer [W_rel ; W_root] (pre-transposed)
#   b_ref : (L, 1, C_PAD)         f32    per-layer lin_rel bias (zero-padded)
#   o_ref : (Np, C_PAD)           f32    padded output of the last decoder layer
# ----------------------------------------------------------------------------
def _fused_gconv_ae_kernel(a_ref, x_ref, w_ref, b_ref, o_ref, *, num_layers):
    a = a_ref[...]                     # (Np, Np) bf16, loaded once for all layers
    h = x_ref[...]                     # (Np, C_PAD) f32 carried activation

    for l in range(num_layers):        # static unroll (small, fixed layer count)
        h_bf = h.astype(jnp.bfloat16)
        # Neighbor aggregation on the MXU: agg = A @ h
        agg = jnp.dot(a, h_bf, preferred_element_type=jnp.float32)   # (Np, C_PAD) f32
        # Merged rel/root matmul: [agg | h] @ [[W_rel],[W_root]]  (one K=256 MXU pass)
        cat = jnp.concatenate([agg.astype(jnp.bfloat16), h_bf], axis=1)  # (Np, 2*C_PAD)
        y = jnp.dot(cat, w_ref[l], preferred_element_type=jnp.float32)
        y = y + b_ref[l]                                              # (1, C_PAD) bias
        if l < num_layers - 1:          # ReLU after every layer except the final one
            y = jnp.maximum(y, 0.0)
        h = y

    o_ref[...] = h                      # full-lane (128-wide) unmasked store


def gconv_ae_fused_pallas(a_bf16, x_pad, w_packed, b_packed):
    n_pad = x_pad.shape[0]
    num_layers = w_packed.shape[0]
    vmem = pl.BlockSpec(memory_space=pltpu.MemorySpace.VMEM)
    return pl.pallas_call(
        functools.partial(_fused_gconv_ae_kernel, num_layers=num_layers),
        out_shape=jax.ShapeDtypeStruct((n_pad, C_PAD), jnp.float32),
        in_specs=[vmem, vmem, vmem, vmem],
        out_specs=vmem,
    )(a_bf16, x_pad, w_packed, b_packed)


# ----------------------------------------------------------------------------
# Parameter construction (deterministic, synthetic) and model glue.
# ----------------------------------------------------------------------------
def make_graphconv_params(key, c_in, c_out):
    k1, k2, k3 = jax.random.split(key, 3)
    scale = 1.0 / jnp.sqrt(jnp.float32(c_in))
    # Stored already transposed: (Cin, Cout) so the kernel does x @ W.
    w_rel = jax.random.uniform(k1, (c_in, c_out), jnp.float32, -scale, scale)
    w_root = jax.random.uniform(k2, (c_in, c_out), jnp.float32, -scale, scale)
    b_rel = jax.random.uniform(k3, (c_out,), jnp.float32, -scale, scale)
    return {"w_rel": w_rel, "w_root": w_root, "b": b_rel}


def build_gconv_ae_params(key, layer_dims):
    enc_dims = list(zip(layer_dims[:-1], layer_dims[1:]))
    rev = layer_dims[::-1]
    dec_dims = list(zip(rev[:-1], rev[1:]))
    keys = jax.random.split(key, len(enc_dims) + len(dec_dims))
    enc = [make_graphconv_params(keys[i], ci, co) for i, (ci, co) in enumerate(enc_dims)]
    dec = [make_graphconv_params(keys[len(enc_dims) + i], ci, co)
           for i, (ci, co) in enumerate(dec_dims)]
    return enc, dec


def pack_params(enc_params, dec_params, c_pad=C_PAD):
    """Stack all layers into (L, 2*c_pad, c_pad) bf16 weights + (L, 1, c_pad) f32 bias."""
    layers = enc_params + dec_params
    num_layers = len(layers)
    w = jnp.zeros((num_layers, 2 * c_pad, c_pad), jnp.float32)
    b = jnp.zeros((num_layers, 1, c_pad), jnp.float32)
    for l, p in enumerate(layers):
        ci, co = p["w_rel"].shape
        w = w.at[l, :ci, :co].set(p["w_rel"])                 # rows [0, c_pad)      act on agg
        w = w.at[l, c_pad:c_pad + ci, :co].set(p["w_root"])   # rows [c_pad, 2c_pad) act on h
        b = b.at[l, 0, :co].set(p["b"])
    return w.astype(jnp.bfloat16), b


def dense_adjacency(edge_index, edge_weight, num_nodes, num_nodes_pad=None):
    # A[target, source] = edge_weight  (message flows source -> target, summed at target)
    if num_nodes_pad is None:
        num_nodes_pad = num_nodes
    src = edge_index[0]
    tgt = edge_index[1]
    a = jnp.zeros((num_nodes_pad, num_nodes_pad), jnp.float32)
    return a.at[tgt, src].add(edge_weight)
    # TODO(synk): for large sparse graphs, replace dense A@x with a scalar-prefetch
    # CSR gather kernel instead of the O(N^2) dense adjacency.


def gconv_ae_forward(x, edge_index, edge_weight, enc_params, dec_params):
    n, c_in = x.shape
    n_pad = _round_up(n, N_ALIGN)
    c_out_final = dec_params[-1]["w_rel"].shape[1]
    a = dense_adjacency(edge_index, edge_weight, n, n_pad).astype(jnp.bfloat16)
    x_pad = jnp.zeros((n_pad, C_PAD), jnp.float32).at[:n, :c_in].set(x)
    w_packed, b_packed = pack_params(enc_params, dec_params)
    out_pad = gconv_ae_fused_pallas(a, x_pad, w_packed, b_packed)
    return out_pad[:n, :c_out_final]


# ----------------------------------------------------------------------------
# References for correctness checking.
# ----------------------------------------------------------------------------
def gconv_ae_reference_f32(x, edge_index, edge_weight, enc_params, dec_params):
    """Pure f32 reference matching the original torch module's math."""
    n = x.shape[0]
    a = dense_adjacency(edge_index, edge_weight, n)

    def layer(h, p, relu):
        y = (a @ h) @ p["w_rel"] + h @ p["w_root"] + p["b"][None, :]
        return jnp.maximum(y, 0.0) if relu else y

    h = x
    for p in enc_params:
        h = layer(h, p, True)
    for i, p in enumerate(dec_params):
        h = layer(h, p, i < len(dec_params) - 1)
    return h


def gconv_ae_reference_bf16(a_bf16, x_pad, w_packed, b_packed):
    """Plain-JAX replica of the fused kernel math (bf16 MXU inputs, f32 accumulation)."""
    h = x_pad
    num_layers = w_packed.shape[0]
    for l in range(num_layers):
        h_bf = h.astype(jnp.bfloat16)
        agg = jnp.dot(a_bf16, h_bf, preferred_element_type=jnp.float32)
        cat = jnp.concatenate([agg.astype(jnp.bfloat16), h_bf], axis=1)
        y = jnp.dot(cat, w_packed[l], preferred_element_type=jnp.float32) + b_packed[l]
        if l < num_layers - 1:
            y = jnp.maximum(y, 0.0)
        h = y
    return h


if __name__ == "__main__":
    key = jax.random.PRNGKey(0)
    k_feat, k_edges, k_w, k_params = jax.random.split(key, 4)

    layer_dims = [4, 8, 16]       # encoder 4->8->16, decoder 16->8->4
    num_nodes = 16
    num_edges = 32

    x = jax.random.normal(k_feat, (num_nodes, layer_dims[0]), jnp.float32)
    edge_index = jax.random.randint(k_edges, (2, num_edges), 0, num_nodes, jnp.int32)
    edge_weight = jax.random.uniform(k_w, (num_edges,), jnp.float32, 0.1, 1.0)

    enc_params, dec_params = build_gconv_ae_params(k_params, layer_dims)

    out = gconv_ae_forward(x, edge_index, edge_weight, enc_params, dec_params)
    out = jax.block_until_ready(out)
    assert out.shape == (num_nodes, layer_dims[0]), out.shape

    # (1) Tight check against an exact plain-JAX replica of the kernel math.
    n_pad = _round_up(num_nodes, N_ALIGN)
    a_bf16 = dense_adjacency(edge_index, edge_weight, num_nodes, n_pad).astype(jnp.bfloat16)
    x_pad = jnp.zeros((n_pad, C_PAD), jnp.float32).at[:num_nodes, :layer_dims[0]].set(x)
    w_packed, b_packed = pack_params(enc_params, dec_params)
    ref_bf16 = gconv_ae_reference_bf16(a_bf16, x_pad, w_packed, b_packed)[:num_nodes, :layer_dims[0]]
    assert jnp.allclose(out, ref_bf16, atol=1e-2, rtol=1e-2), "mismatch vs bf16 replica"

    # (2) Looser semantic check against the full-f32 reference (bf16 matmul inputs
    #     lose mantissa bits, so tolerance is relaxed accordingly).
    ref_f32 = gconv_ae_reference_f32(x, edge_index, edge_weight, enc_params, dec_params)
    assert jnp.allclose(out, ref_f32, atol=0.1, rtol=0.05), "mismatch vs f32 reference"

    print("KERNEL_OK")
</pallas_src>

<mosaic_0001>
module attributes {stable_mosaic.version = 11 : i64} {
  func.func @_fused_gconv_ae_kernel(%arg0: memref<16x16xbf16, #tpu.memory_space<vmem>>, %arg1: memref<16x128xf32, #tpu.memory_space<vmem>>, %arg2: memref<4x256x128xbf16, #tpu.memory_space<vmem>>, %arg3: memref<4x1x128xf32, #tpu.memory_space<vmem>>, %arg4: memref<16x128xf32, #tpu.memory_space<vmem>>) attributes {dimension_semantics = [], scalar_prefetch = 0 : i64, scratch_operands = 0 : i64, tpu.core_type = #tpu.core_type<tc>} {
    %c0 = arith.constant 0 : index
    %c0_0 = arith.constant 0 : index
    %0 = vector.load %arg0[%c0, %c0_0] : memref<16x16xbf16, #tpu.memory_space<vmem>>, vector<16x16xbf16>
    %c0_1 = arith.constant 0 : index
    %c0_2 = arith.constant 0 : index
    %1 = vector.load %arg1[%c0_1, %c0_2] : memref<16x128xf32, #tpu.memory_space<vmem>>, vector<16x128xf32>
    %2 = arith.truncf %1 : vector<16x128xf32> to vector<16x128xbf16>
    %cst = arith.constant dense<0.000000e+00> : vector<16x128xf32>
    %3 = tpu.matmul %0, %2, %cst {dimension_numbers = #tpu.dot_dimension_numbers<[1], [0], [0], [1], [0, 0, 1, 1], [], []>} : vector<16x16xbf16>, vector<16x128xbf16>, vector<16x128xf32> -> vector<16x128xf32>
    %4 = arith.truncf %3 : vector<16x128xf32> to vector<16x128xbf16>
    %5 = tpu.concatenate %4, %2 in 1 : vector<16x128xbf16>, vector<16x128xbf16> -> vector<16x256xbf16>
    %c0_3 = arith.constant 0 : index
    %c0_4 = arith.constant 0 : index
    %c0_5 = arith.constant 0 : index
    %6 = vector.load %arg2[%c0_3, %c0_4, %c0_5] : memref<4x256x128xbf16, #tpu.memory_space<vmem>>, vector<1x256x128xbf16>
    %7 = vector.shape_cast %6 : vector<1x256x128xbf16> to vector<256x128xbf16>
    %cst_6 = arith.constant dense<0.000000e+00> : vector<16x128xf32>
    %8 = tpu.matmul %5, %7, %cst_6 {dimension_numbers = #tpu.dot_dimension_numbers<[1], [0], [0], [1], [0, 0, 1, 1], [], []>} : vector<16x256xbf16>, vector<256x128xbf16>, vector<16x128xf32> -> vector<16x128xf32>
    %c0_7 = arith.constant 0 : index
    %c0_8 = arith.constant 0 : index
    %c0_9 = arith.constant 0 : index
    %9 = vector.load %arg3[%c0_7, %c0_8, %c0_9] : memref<4x1x128xf32, #tpu.memory_space<vmem>>, vector<1x1x128xf32>
    %10 = vector.shape_cast %9 : vector<1x1x128xf32> to vector<1x128xf32>
    %11 = vector.broadcast %10 : vector<1x128xf32> to vector<16x128xf32>
    %12 = arith.addf %8, %11 : vector<16x128xf32>
    %cst_10 = arith.constant 0.000000e+00 : f32
    %13 = vector.broadcast %cst_10 : f32 to vector<16x128xf32>
    %14 = arith.maximumf %12, %13 : vector<16x128xf32>
    %15 = arith.truncf %14 : vector<16x128xf32> to vector<16x128xbf16>
    %cst_11 = arith.constant dense<0.000000e+00> : vector<16x128xf32>
    %16 = tpu.matmul %0, %15, %cst_11 {dimension_numbers = #tpu.dot_dimension_numbers<[1], [0], [0], [1], [0, 0, 1, 1], [], []>} : vector<16x16xbf16>, vector<16x128xbf16>, vector<16x128xf32> -> vector<16x128xf32>
    %17 = arith.truncf %16 : vector<16x128xf32> to vector<16x128xbf16>
    %18 = tpu.concatenate %17, %15 in 1 : vector<16x128xbf16>, vector<16x128xbf16> -> vector<16x256xbf16>
    %c1 = arith.constant 1 : index
    %c0_12 = arith.constant 0 : index
    %c0_13 = arith.constant 0 : index
    %19 = vector.load %arg2[%c1, %c0_12, %c0_13] : memref<4x256x128xbf16, #tpu.memory_space<vmem>>, vector<1x256x128xbf16>
    %20 = vector.shape_cast %19 : vector<1x256x128xbf16> to vector<256x128xbf16>
    %cst_14 = arith.constant dense<0.000000e+00> : vector<16x128xf32>
    %21 = tpu.matmul %18, %20, %cst_14 {dimension_numbers = #tpu.dot_dimension_numbers<[1], [0], [0], [1], [0, 0, 1, 1], [], []>} : vector<16x256xbf16>, vector<256x128xbf16>, vector<16x128xf32> -> vector<16x128xf32>
    %c1_15 = arith.constant 1 : index
    %c0_16 = arith.constant 0 : index
    %c0_17 = arith.constant 0 : index
    %22 = vector.load %arg3[%c1_15, %c0_16, %c0_17] : memref<4x1x128xf32, #tpu.memory_space<vmem>>, vector<1x1x128xf32>
    %23 = vector.shape_cast %22 : vector<1x1x128xf32> to vector<1x128xf32>
    %24 = vector.broadcast %23 : vector<1x128xf32> to vector<16x128xf32>
    %25 = arith.addf %21, %24 : vector<16x128xf32>
    %cst_18 = arith.constant 0.000000e+00 : f32
    %26 = vector.broadcast %cst_18 : f32 to vector<16x128xf32>
    %27 = arith.maximumf %25, %26 : vector<16x128xf32>
    %28 = arith.truncf %27 : vector<16x128xf32> to vector<16x128xbf16>
    %cst_19 = arith.constant dense<0.000000e+00> : vector<16x128xf32>
    %29 = tpu.matmul %0, %28, %cst_19 {dimension_numbers = #tpu.dot_dimension_numbers<[1], [0], [0], [1], [0, 0, 1, 1], [], []>} : vector<16x16xbf16>, vector<16x128xbf16>, vector<16x128xf32> -> vector<16x128xf32>
    %30 = arith.truncf %29 : vector<16x128xf32> to vector<16x128xbf16>
    %31 = tpu.concatenate %30, %28 in 1 : vector<16x128xbf16>, vector<16x128xbf16> -> vector<16x256xbf16>
    %c2 = arith.constant 2 : index
    %c0_20 = arith.constant 0 : index
    %c0_21 = arith.constant 0 : index
    %32 = vector.load %arg2[%c2, %c0_20, %c0_21] : memref<4x256x128xbf16, #tpu.memory_space<vmem>>, vector<1x256x128xbf16>
    %33 = vector.shape_cast %32 : vector<1x256x128xbf16> to vector<256x128xbf16>
    %cst_22 = arith.constant dense<0.000000e+00> : vector<16x128xf32>
    %34 = tpu.matmul %31, %33, %cst_22 {dimension_numbers = #tpu.dot_dimension_numbers<[1], [0], [0], [1], [0, 0, 1, 1], [], []>} : vector<16x256xbf16>, vector<256x128xbf16>, vector<16x128xf32> -> vector<16x128xf32>
    %c2_23 = arith.constant 2 : index
    %c0_24 = arith.constant 0 : index
    %c0_25 = arith.constant 0 : index
    %35 = vector.load %arg3[%c2_23, %c0_24, %c0_25] : memref<4x1x128xf32, #tpu.memory_space<vmem>>, vector<1x1x128xf32>
    %36 = vector.shape_cast %35 : vector<1x1x128xf32> to vector<1x128xf32>
    %37 = vector.broadcast %36 : vector<1x128xf32> to vector<16x128xf32>
    %38 = arith.addf %34, %37 : vector<16x128xf32>
    %cst_26 = arith.constant 0.000000e+00 : f32
    %39 = vector.broadcast %cst_26 : f32 to vector<16x128xf32>
    %40 = arith.maximumf %38, %39 : vector<16x128xf32>
    %41 = arith.truncf %40 : vector<16x128xf32> to vector<16x128xbf16>
    %cst_27 = arith.constant dense<0.000000e+00> : vector<16x128xf32>
    %42 = tpu.matmul %0, %41, %cst_27 {dimension_numbers = #tpu.dot_dimension_numbers<[1], [0], [0], [1], [0, 0, 1, 1], [], []>} : vector<16x16xbf16>, vector<16x128xbf16>, vector<16x128xf32> -> vector<16x128xf32>
    %43 = arith.truncf %42 : vector<16x128xf32> to vector<16x128xbf16>
    %44 = tpu.concatenate %43, %41 in 1 : vector<16x128xbf16>, vector<16x128xbf16> -> vector<16x256xbf16>
    %c3 = arith.constant 3 : index
    %c0_28 = arith.constant 0 : index
    %c0_29 = arith.constant 0 : index
    %45 = vector.load %arg2[%c3, %c0_28, %c0_29] : memref<4x256x128xbf16, #tpu.memory_space<vmem>>, vector<1x256x128xbf16>
    %46 = vector.shape_cast %45 : vector<1x256x128xbf16> to vector<256x128xbf16>
    %cst_30 = arith.constant dense<0.000000e+00> : vector<16x128xf32>
    %47 = tpu.matmul %44, %46, %cst_30 {dimension_numbers = #tpu.dot_dimension_numbers<[1], [0], [0], [1], [0, 0, 1, 1], [], []>} : vector<16x256xbf16>, vector<256x128xbf16>, vector<16x128xf32> -> vector<16x128xf32>
    %c3_31 = arith.constant 3 : index
    %c0_32 = arith.constant 0 : index
    %c0_33 = arith.constant 0 : index
    %48 = vector.load %arg3[%c3_31, %c0_32, %c0_33] : memref<4x1x128xf32, #tpu.memory_space<vmem>>, vector<1x1x128xf32>
    %49 = vector.shape_cast %48 : vector<1x1x128xf32> to vector<1x128xf32>
    %50 = vector.broadcast %49 : vector<1x128xf32> to vector<16x128xf32>
    %51 = arith.addf %47, %50 : vector<16x128xf32>
    %c0_34 = arith.constant 0 : index
    %c0_35 = arith.constant 0 : index
    %52 = vector.load %arg4[%c0_34, %c0_35] : memref<16x128xf32, #tpu.memory_space<vmem>>, vector<16x128xf32>
    tpu.vector_store %arg4[%c0_34, %c0_35], %51 {strides = array<i32>} : memref<16x128xf32, #tpu.memory_space<vmem>>, vector<16x128xf32>,
    return
  }
}

</mosaic_0001>

<bundles_post_ra>
// kernel: tpu_custom_call.1
= control target key start
LH: loop header
LB: loop body
LE: loop exit
PB: predicated region body
PF: predicated region fallthrough
CT: control target
= control target key end

     0   :  { %9 = vsyncpa [#allocation3], 0  ;;  %s1425_s0 = inlined_call_operand.hbm [shape: bf16[16,16], index: 0, kind: input, shape index: {}]   ;;  %s1426_s1 = inlined_call_operand.hbm [shape: f32[16,128], index: 1, kind: input, shape index: {}]   ;;  %s1427_s2 = inlined_call_operand.hbm [shape: bf16[4,256,128], index: 2, kind: input, shape index: {}]   ;;  %s1428_s3 = inlined_call_operand.vmem [shape: f32[4,1,128], index: 3, kind: input, shape index: {}]   ;;  %s1429_s4 = inlined_call_operand.hbm [shape: f32[16,128], index: 4, kind: output, shape index: {}]  }
   0x1   :  { %10 = vsyncpa [#allocation6], 0 }
   0x2   :  { %11 = vsyncpa [#allocation4], 0  ;;  %s1338_s15 = smov [#allocation5]  }
   0x3   :  { %s29_s16 = sshll.u32 %s1338_s15, 4  ;;  %s30_s16 = int_to_ptr.vmem [resolvable:$true] %s29_s16 }
   0x4   :  { %s1260_s17 = scalar_lea.vmem %s30_s16, 256  ;;  %p1265_p1 = scmp.lt.s32.totalorder %s30_s16, %s30_s16 }
   0x5   :  { %p1261_p0 = scmp.ne.s32.totalorder %s30_s16, %s1260_s17  ;;  %p1266_p2 = scmp.lt.s32.totalorder %s1260_s17, %s1260_s17 }
   0x7   :  { %p1267_p3 = por %p1266_p2, %p1265_p1 }
   0x9   :  { %p1268_p4 = pnand %p1267_p3, %p1261_p0 }
   0xb   :  { %1271 = shalt.err (!%p1268_p4)
}
   0xc   :  { %s1339_s18 = smov 128   ;;  %s1340_s19 = smov 8  }
   0xd   :  { %35 = dma.hbm_to_vmem [thread:$0]  %s1426_s1, 256, %s30_s16, [#allocation6], %s1339_s18, %s1339_s18, %s1340_s19  }
   0xe   :  { %s1341_s22 = smov [#allocation2]  }
   0xf   :  { %s17_s23 = sshll.u32 %s1341_s22, 4  ;;  %s18_s23 = int_to_ptr.vmem [resolvable:$true] %s17_s23 }
  0x10   :  { %s1280_s24 = scalar_lea.vmem %s18_s23, 128  ;;  %p1285_p6 = scmp.lt.s32.totalorder %s18_s23, %s18_s23 }
  0x11   :  { %p1281_p5 = scmp.ne.s32.totalorder %s18_s23, %s1280_s24  ;;  %p1286_p7 = scmp.lt.s32.totalorder %s1280_s24, %s1280_s24 }
  0x13   :  { %p1287_p8 = por %p1286_p7, %p1285_p6 }
  0x15   :  { %p1288_p9 = pnand %p1287_p8, %p1281_p5 }
  0x17   :  { %1291 = shalt.err (!%p1288_p9)
}
  0x18   :  { %s1342_s25 = smov 64   ;;  %s1343_s26 = smov 4  }
  0x19   :  { %23 = dma.hbm_to_vmem [thread:$0]  %s1425_s0, 128, %s18_s23, [#allocation3], %s1342_s25, %s1342_s25, %s1343_s26  }
  0x1a   :  { %s1344_s29 = smov [#allocation7]  }
  0x1b   :  { %s41_s30 = sshll.u32 %s1344_s29, 4  ;;  %s42_s30 = int_to_ptr.vmem [resolvable:$true] %s41_s30 }
  0x1c   :  { %s1300_s1 = scalar_lea.vmem %s42_s30, 8192  ;;  %p1305_p11 = scmp.lt.s32.totalorder %s42_s30, %s42_s30 }
  0x1d   :  { %p1301_p10 = scmp.ne.s32.totalorder %s42_s30, %s1300_s1  ;;  %p1306_p12 = scmp.lt.s32.totalorder %s1300_s1, %s1300_s1 }
  0x1f   :  { %p1307_p13 = por %p1306_p12, %p1305_p11 }
  0x21   :  { %p1308_p0 = pnand %p1307_p13, %p1301_p10 }
  0x23   :  { %1311 = shalt.err (!%p1308_p0)
}
  0x24   :  { %47 = dma.hbm_to_vmem [thread:$0]  %s1427_s2, 8192, %s42_s30, [#allocation6], %s1342_s25, %s1342_s25, %s1343_s26  }
  0x25   :  { %1332 = dma.done.wait [#allocation3], 128  }
  0x26   :  { %1333 = vsyncadd [#allocation3], 4294967168 }
  0x27   :  { %1334 = dma.done.wait [#allocation6], 8448  }
  0x28   :  { %1335 = vsyncadd [#allocation6], 4294958848  ;;  %v1345_v0 = vmov 0.0   ;;  %vm1346_vm0 = vmmov 0   ;;  %v62_v1 = vld [vmem:[#allocation5] sm:$0xff]  ;;  %v63_v2 = vld [vmem:[#allocation5 + $0x8] sm:$0xff] }
  0x29   :  { %1153 = vmatprep.subr.bf16.mxu1 %v1345_v0  ;;  %1155 = vmatprep.mubr.msk.bf16.mxu1 %vm1346_vm0, %v1345_v0  ;;  %v64_v3 = vpack.c.bf16 %v63_v2, %v62_v1  ;;  %v1391_v4 = vld [vmem:[#allocation2] sm:$0xff]   ;;  %v1188_v5 = vld [vmem:[#allocation7 + $0x78] sm:$0xff]   ;;  %vm70_vm1 = vcmask 130048   ;;  %v1190_v7 = vld [vmem:[#allocation7 + $0x70] sm:$0xff]   ;;  %s1347_s13 = smov [#allocation8]  }
  0x2a   :  { %1159 = vmatprep.subr.bf16.mxu0 %v1345_v0  ;;  %1161 = vmatprep.mubr.msk.bf16.mxu0 %vm1346_vm0, %v1345_v0  ;;  %v1189_v6 = vld [vmem:[#allocation7 + $0x38] sm:$0xff]   ;;  %v1191_v8 = vld [vmem:[#allocation7 + $0x30] sm:$0xff]   ;;  %v1192_v9 = vld [vmem:[#allocation7 + $0x68] sm:$0xff]   ;;  %s968_s14 = sshll.u32 %s1347_s13, 4  ;;  %s969_s14 = int_to_ptr.vmem [resolvable:$true] %s968_s14 }
  0x2b   :  { %1154 = vmatpush3.bf16.msra.mxu1 %v64_v3  ;;  %v1193_v10 = vld [vmem:[#allocation7 + $0x28] sm:$0xff]   ;;  %v1194_v11 = vld [vmem:[#allocation7 + $0x60] sm:$0xff]   ;;  %v1196_v13 = vld [vmem:[#allocation7 + $0x58] sm:$0xff]   ;;  %s1312_s15 = scalar_lea.vmem %s969_s14, 256  ;;  %p1317_p2 = scmp.lt.s32.totalorder %s969_s14, %s969_s14 }
  0x2c   :  { %1059 = vmatprep.subr.bf16.mxu1 %v1188_v5  ;;  %v1195_v12 = vld [vmem:[#allocation7 + $0x20] sm:$0xff]   ;;  %v1197_v14 = vld [vmem:[#allocation7 + $0x18] sm:$0xff]   ;;  %v1198_v15 = vld [vmem:[#allocation7 + $0x50] sm:$0xff]   ;;  %p1313_p1 = scmp.ne.s32.totalorder %s969_s14, %s1312_s15  ;;  %p1318_p3 = scmp.lt.s32.totalorder %s1312_s15, %s1312_s15 }
  0x2d   :  { %v1199_v16 = vld [vmem:[#allocation7 + $0x10] sm:$0xff]   ;;  %v1200_v17 = vld [vmem:[#allocation7 + $0x48] sm:$0xff]   ;;  %v1202_v19 = vld [vmem:[#allocation7 + $0x40] sm:$0xff]  }
  0x2e   :  { %1156 = vmatmul.mubr.msk.bf16.vlgmr.msra.gmra.mxu1 %vm70_vm1, %v1391_v4  ;;  %v1201_v18 = vld [vmem:[#allocation7 + $0x8] sm:$0xff]   ;;  %v1203_v20 = vld [vmem:[#allocation7] sm:$0xff]   ;;  %v1204_v37 = vld [vmem:[#allocation7 + $0xf8] sm:$0xff]   ;;  %p1319_p4 = por %p1318_p3, %p1317_p2 }
  0x2f   :  { %1060 = vmatpush3.bf16.msra.mxu1 %v1189_v6  ;;  %283 = vmatprep.mubr.bf16.mxu1 %v64_v3  ;;  %v983_v29 = vld [vmem:[%s1428_s3] ss:$0 sm:$0xff]  ;;  %v1205_v39 = vld [vmem:[#allocation7 + $0xb8] sm:$0xff]   ;;  %v1206_v40 = vld [vmem:[#allocation7 + $0xf0] sm:$0xff]  }
  0x30   :  { %1061 = vmatprep.subr.bf16.mxu1 %v1190_v7  ;;  %v1207_v41 = vld [vmem:[#allocation7 + $0xb0] sm:$0xff]   ;;  %v1208_v42 = vld [vmem:[#allocation7 + $0xe8] sm:$0xff]   ;;  %v1210_v44 = vld [vmem:[#allocation7 + $0xe0] sm:$0xff]   ;;  %p1320_p5 = pnand %p1319_p4, %p1313_p1 }
  0x31   :  { %v1209_v43 = vld [vmem:[#allocation7 + $0xa8] sm:$0xff]   ;;  %v1211_v45 = vld [vmem:[#allocation7 + $0xa0] sm:$0xff]   ;;  %v1212_v46 = vld [vmem:[#allocation7 + $0xd8] sm:$0xff]  }
  0x32   :  { %v1213_v47 = vld [vmem:[#allocation7 + $0x98] sm:$0xff]   ;;  %v1214_v48 = vld [vmem:[#allocation7 + $0xd0] sm:$0xff]   ;;  %v1216_v50 = vld [vmem:[#allocation7 + $0xc8] sm:$0xff]  }
  0x33   :  { %1062 = vmatpush3.bf16.msra.mxu1 %v1191_v8  ;;  %v1215_v49 = vld [vmem:[#allocation7 + $0x90] sm:$0xff]   ;;  %v1217_v51 = vld [vmem:[#allocation7 + $0x88] sm:$0xff]   ;;  %v1218_v52 = vld [vmem:[#allocation7 + $0xc0] sm:$0xff]  }
  0x34   :  { %1063 = vmatprep.subr.bf16.mxu1 %v1192_v9  ;;  %v1219_v53 = vld [vmem:[#allocation7 + $0x80] sm:$0xff]   ;;  %v1002_v62 = vld [vmem:[%s1428_s3 + $0x1] ss:$0 sm:$0xff]  ;;  %v1220_v8 = vld [vmem:[#allocation7 + $0x178] sm:$0xff]  }
  0x37   :  { %1064 = vmatpush3.bf16.msra.mxu1 %v1193_v10  ;;  %v1221_v10 = vld [vmem:[#allocation7 + $0x138] sm:$0xff]  }
  0x38   :  { %1065 = vmatprep.subr.bf16.mxu1 %v1194_v11  ;;  %v1223_v11 = vld [vmem:[#allocation7 + $0x130] sm:$0xff]  }
  0x3b   :  { %1066 = vmatpush3.bf16.msra.mxu1 %v1195_v12  ;;  %v1224_v12 = vld [vmem:[#allocation7 + $0x168] sm:$0xff]  }
  0x3c   :  { %1067 = vmatprep.subr.bf16.mxu1 %v1196_v13  ;;  %v1225_v13 = vld [vmem:[#allocation7 + $0x128] sm:$0xff]  }
  0x3f   :  { %1068 = vmatpush3.bf16.msra.mxu1 %v1197_v14  ;;  %v1226_v14 = vld [vmem:[#allocation7 + $0x160] sm:$0xff]  }
  0x40   :  { %1069 = vmatprep.subr.bf16.mxu1 %v1198_v15  ;;  %v1227_v15 = vld [vmem:[#allocation7 + $0x120] sm:$0xff]  }
  0x43   :  { %1070 = vmatpush3.bf16.msra.mxu1 %v1199_v16  ;;  %v1228_v16 = vld [vmem:[#allocation7 + $0x158] sm:$0xff]  }
  0x44   :  { %1071 = vmatprep.subr.bf16.mxu1 %v1200_v17  ;;  %v1229_v17 = vld [vmem:[#allocation7 + $0x118] sm:$0xff]  }
  0x47   :  { %1072 = vmatpush3.bf16.msra.mxu1 %v1201_v18  ;;  %v1230_v18 = vld [vmem:[#allocation7 + $0x150] sm:$0xff]  }
  0x48   :  { %1073 = vmatprep.subr.bf16.mxu1 %v1202_v19  ;;  %v1231_v19 = vld [vmem:[#allocation7 + $0x110] sm:$0xff]  }
  0x4b   :  { %1074 = vmatpush3.bf16.msra.mxu1 %v1203_v20  ;;  %v1232_v20 = vld [vmem:[#allocation7 + $0x148] sm:$0xff]  }
  0x4c   :  { %1165 = vmatprep.subr.bf16.mxu1 %v1345_v0 }
  0xee   :  { %v108_v21 = vpop.f32.mrf.mxu1 }
  0xf0   :  { %v1157_v22 = vpop.f32.mrf.mxu1 }
  0xf1   :  { %v1234_v22 = vld [vmem:[#allocation7 + $0x140] sm:$0xff]  }
  0xf2   :  { %v111_v23 = vpop.f32.mrf.mxu1 }
  0xf3   :  { %v115_v24 = vpack.c.bf16 %v111_v23, %v108_v21  ;;  %v1233_v21 = vld [vmem:[#allocation7 + $0x108] sm:$0xff]   ;;  %v1235_v23 = vld [vmem:[#allocation7 + $0x100] sm:$0xff]  }
  0xf4   :  { %v1158_v25 = vpop.f32.mrf.mxu1 }
  0xf5   :  { %284 = vmatmul.mubr.bf16.vlgmr.msra.gmra.mxu1 %v115_v24 }
  0xf6   :  { %1167 = vmatprep.mubr.msk.bf16.mxu1 %vm1346_vm0, %v1345_v0 }
 0x1b5   :  { %v1075_v26 = vpop.f32.mrf.mxu1 }
 0x1b7   :  { %v1076_v27 = vpop.f32.mrf.mxu1 }
 0x1b8   :  { %v1077_v28 = vadd.f32 %v1076_v27, %v1075_v26 }
 0x1b9   :  { %v1078_v30 = vpop.f32.mrf.mxu1 }
 0x1ba   :  { %v286_v32 = vadd.f32 %v1077_v28, %v983_v29 }
 0x1bb   :  { %v1079_v31 = vpop.f32.mrf.mxu1 }
 0x1bc   :  { %v1080_v33 = vadd.f32 %v1079_v31, %v1078_v30  ;;  %v292_v35 = vmax.f32 %v286_v32, 0.0  ;;  %v1021_v32 = vld [vmem:[%s1428_s3 + $0x2] ss:$0 sm:$0xff] }
 0x1be   :  { %v289_v34 = vadd.f32 %v1080_v33, %v983_v29 }
 0x1c0   :  { %v293_v36 = vmax.f32 %v289_v34, 0.0 }
 0x1c2   :  { %v294_v38 = vpack.c.bf16 %v293_v36, %v292_v35 }
 0x1c4   :  { %1160 = vmatpush3.bf16.msra.mxu0 %v294_v38 }
 0x1c5   :  { %1083 = vmatprep.subr.bf16.mxu0 %v1204_v37 }
 0x1c7   :  { %1162 = vmatmul.mubr.msk.bf16.vlgmr.msra.gmra.mxu0 %vm70_vm1, %v1391_v4 }
 0x1c8   :  { %506 = vmatprep.mubr.bf16.mxu0 %v294_v38  ;;  %1084 = vmatpush3.bf16.msra.mxu0 %v1205_v39 }
 0x1c9   :  { %1085 = vmatprep.subr.bf16.mxu0 %v1206_v40  ;;  %v1236_v40 = vld [vmem:[#allocation7 + $0x1f8] sm:$0xff]  }
 0x1cc   :  { %1086 = vmatpush3.bf16.msra.mxu0 %v1207_v41 }
 0x1cd   :  { %1087 = vmatprep.subr.bf16.mxu0 %v1208_v42  ;;  %v1237_v42 = vld [vmem:[#allocation7 + $0x1b8] sm:$0xff]  }
 0x1d0   :  { %1088 = vmatpush3.bf16.msra.mxu0 %v1209_v43  ;;  %v1238_v43 = vld [vmem:[#allocation7 + $0x1f0] sm:$0xff]  }
 0x1d1   :  { %1089 = vmatprep.subr.bf16.mxu0 %v1210_v44  ;;  %v1239_v44 = vld [vmem:[#allocation7 + $0x1b0] sm:$0xff]  }
 0x1d4   :  { %1090 = vmatpush3.bf16.msra.mxu0 %v1211_v45  ;;  %v1240_v45 = vld [vmem:[#allocation7 + $0x1e8] sm:$0xff]  }
 0x1d5   :  { %1091 = vmatprep.subr.bf16.mxu0 %v1212_v46  ;;  %v1241_v46 = vld [vmem:[#allocation7 + $0x1a8] sm:$0xff]  }
 0x1d8   :  { %1092 = vmatpush3.bf16.msra.mxu0 %v1213_v47  ;;  %v1242_v47 = vld [vmem:[#allocation7 + $0x1e0] sm:$0xff]  }
 0x1d9   :  { %1093 = vmatprep.subr.bf16.mxu0 %v1214_v48  ;;  %v1243_v48 = vld [vmem:[#allocation7 + $0x1a0] sm:$0xff]  }
 0x1dc   :  { %1094 = vmatpush3.bf16.msra.mxu0 %v1215_v49  ;;  %v1244_v49 = vld [vmem:[#allocation7 + $0x1d8] sm:$0xff]  }
 0x1dd   :  { %1095 = vmatprep.subr.bf16.mxu0 %v1216_v50  ;;  %v1245_v50 = vld [vmem:[#allocation7 + $0x198] sm:$0xff]  }
 0x1e0   :  { %1096 = vmatpush3.bf16.msra.mxu0 %v1217_v51  ;;  %v1246_v51 = vld [vmem:[#allocation7 + $0x1d0] sm:$0xff]  }
 0x1e1   :  { %1097 = vmatprep.subr.bf16.mxu0 %v1218_v52  ;;  %v1247_v52 = vld [vmem:[#allocation7 + $0x190] sm:$0xff]  }
 0x1e4   :  { %1098 = vmatpush3.bf16.msra.mxu0 %v1219_v53  ;;  %v1249_v53 = vld [vmem:[#allocation7 + $0x188] sm:$0xff]  }
 0x1e5   :  { %1171 = vmatprep.subr.bf16.mxu0 %v1345_v0 }
 0x287   :  { %v329_v54 = vpop.f32.mrf.mxu0 }
 0x289   :  { %v1163_v55 = vpop.f32.mrf.mxu0 }
 0x28a   :  { %v1251_v55 = vld [vmem:[#allocation7 + $0x180] sm:$0xff]  }
 0x28b   :  { %v332_v56 = vpop.f32.mrf.mxu0 }
 0x28c   :  { %v336_v57 = vpack.c.bf16 %v332_v56, %v329_v54  ;;  %v1250_v54 = vld [vmem:[#allocation7 + $0x1c0] sm:$0xff]  }
 0x28d   :  { %v1164_v58 = vpop.f32.mrf.mxu0 }
 0x28e   :  { %507 = vmatmul.mubr.bf16.vlgmr.msra.gmra.mxu0 %v336_v57 }
 0x28f   :  { %1173 = vmatprep.mubr.msk.bf16.mxu0 %vm1346_vm0, %v1345_v0  ;;  %v1222_v0 = vld [vmem:[#allocation7 + $0x170] sm:$0xff]  }
 0x34e   :  { %v1099_v59 = vpop.f32.mrf.mxu0 }
 0x350   :  { %v1100_v60 = vpop.f32.mrf.mxu0 }
 0x351   :  { %v1101_v61 = vadd.f32 %v1100_v60, %v1099_v59 }
 0x352   :  { %v1102_v63 = vpop.f32.mrf.mxu0 }
 0x353   :  { %v509_v2 = vadd.f32 %v1101_v61, %v1002_v62 }
 0x354   :  { %v1103_v1 = vpop.f32.mrf.mxu0 }
 0x355   :  { %v1104_v3 = vadd.f32 %v1103_v1, %v1102_v63  ;;  %v515_v6 = vmax.f32 %v509_v2, 0.0 }
 0x357   :  { %v512_v5 = vadd.f32 %v1104_v3, %v1002_v62  ;;  %v1040_v62 = vld [vmem:[%s1428_s3 + $0x3] ss:$0 sm:$0xff] }
 0x359   :  { %v516_v7 = vmax.f32 %v512_v5, 0.0 }
 0x35b   :  { %v517_v9 = vpack.c.bf16 %v516_v7, %v515_v6 }
 0x35d   :  { %1166 = vmatpush3.bf16.msra.mxu1 %v517_v9 }
 0x35e   :  { %1107 = vmatprep.subr.bf16.mxu1 %v1220_v8 }
 0x360   :  { %1168 = vmatmul.mubr.msk.bf16.vlgmr.msra.gmra.mxu1 %vm70_vm1, %v1391_v4 }
 0x361   :  { %729 = vmatprep.mubr.bf16.mxu1 %v517_v9  ;;  %1108 = vmatpush3.bf16.msra.mxu1 %v1221_v10 }
 0x362   :  { %1109 = vmatprep.subr.bf16.mxu1 %v1222_v0 }
 0x365   :  { %1110 = vmatpush3.bf16.msra.mxu1 %v1223_v11 }
 0x366   :  { %1111 = vmatprep.subr.bf16.mxu1 %v1224_v12 }
 0x369   :  { %1112 = vmatpush3.bf16.msra.mxu1 %v1225_v13 }
 0x36a   :  { %1113 = vmatprep.subr.bf16.mxu1 %v1226_v14 }
 0x36d   :  { %1114 = vmatpush3.bf16.msra.mxu1 %v1227_v15 }
 0x36e   :  { %1115 = vmatprep.subr.bf16.mxu1 %v1228_v16 }
 0x371   :  { %1116 = vmatpush3.bf16.msra.mxu1 %v1229_v17 }
 0x372   :  { %1117 = vmatprep.subr.bf16.mxu1 %v1230_v18 }
 0x375   :  { %1118 = vmatpush3.bf16.msra.mxu1 %v1231_v19 }
 0x376   :  { %1119 = vmatprep.subr.bf16.mxu1 %v1232_v20 }
 0x379   :  { %1120 = vmatpush3.bf16.msra.mxu1 %v1233_v21 }
 0x37a   :  { %1121 = vmatprep.subr.bf16.mxu1 %v1234_v22 }
 0x37d   :  { %1122 = vmatpush3.bf16.msra.mxu1 %v1235_v23 }
 0x420   :  { %v552_v24 = vpop.f32.mrf.mxu1 }
 0x422   :  { %v1169_v25 = vpop.f32.mrf.mxu1 }
 0x424   :  { %v555_v26 = vpop.f32.mrf.mxu1 }
 0x425   :  { %v559_v27 = vpack.c.bf16 %v555_v26, %v552_v24 }
 0x426   :  { %v1170_v28 = vpop.f32.mrf.mxu1 }
 0x427   :  { %730 = vmatmul.mubr.bf16.vlgmr.msra.gmra.mxu1 %v559_v27 }
 0x4e7   :  { %v1123_v29 = vpop.f32.mrf.mxu1 }
 0x4e9   :  { %v1124_v30 = vpop.f32.mrf.mxu1 }
 0x4ea   :  { %v1125_v31 = vadd.f32 %v1124_v30, %v1123_v29 }
 0x4eb   :  { %v1126_v33 = vpop.f32.mrf.mxu1 }
 0x4ec   :  { %v732_v35 = vadd.f32 %v1125_v31, %v1021_v32 }
 0x4ed   :  { %v1127_v34 = vpop.f32.mrf.mxu1 }
 0x4ee   :  { %v1128_v36 = vadd.f32 %v1127_v34, %v1126_v33  ;;  %v738_v38 = vmax.f32 %v732_v35, 0.0 }
 0x4f0   :  { %v735_v37 = vadd.f32 %v1128_v36, %v1021_v32 }
 0x4f2   :  { %v739_v39 = vmax.f32 %v735_v37, 0.0 }
 0x4f4   :  { %v740_v41 = vpack.c.bf16 %v739_v39, %v738_v38 }
 0x4f6   :  { %1172 = vmatpush3.bf16.msra.mxu0 %v740_v41 }
 0x4f7   :  { %1131 = vmatprep.subr.bf16.mxu0 %v1236_v40 }
 0x4f9   :  { %1174 = vmatmul.mubr.msk.bf16.vlgmr.msra.gmra.mxu0 %vm70_vm1, %v1391_v4  ;;  %v1248_v4 = vld [vmem:[#allocation7 + $0x1c8] sm:$0xff]  }
 0x4fa   :  { %952 = vmatprep.mubr.bf16.mxu0 %v740_v41  ;;  %1132 = vmatpush3.bf16.msra.mxu0 %v1237_v42 }
 0x4fb   :  { %1133 = vmatprep.subr.bf16.mxu0 %v1238_v43 }
 0x4fe   :  { %1134 = vmatpush3.bf16.msra.mxu0 %v1239_v44 }
 0x4ff   :  { %1135 = vmatprep.subr.bf16.mxu0 %v1240_v45 }
 0x502   :  { %1136 = vmatpush3.bf16.msra.mxu0 %v1241_v46 }
 0x503   :  { %1137 = vmatprep.subr.bf16.mxu0 %v1242_v47 }
 0x506   :  { %1138 = vmatpush3.bf16.msra.mxu0 %v1243_v48 }
 0x507   :  { %1139 = vmatprep.subr.bf16.mxu0 %v1244_v49 }
 0x50a   :  { %1140 = vmatpush3.bf16.msra.mxu0 %v1245_v50 }
 0x50b   :  { %1141 = vmatprep.subr.bf16.mxu0 %v1246_v51 }
 0x50e   :  { %1142 = vmatpush3.bf16.msra.mxu0 %v1247_v52 }
 0x50f   :  { %1143 = vmatprep.subr.bf16.mxu0 %v1248_v4 }
 0x512   :  { %1144 = vmatpush3.bf16.msra.mxu0 %v1249_v53 }
 0x513   :  { %1145 = vmatprep.subr.bf16.mxu0 %v1250_v54 }
 0x516   :  { %1146 = vmatpush3.bf16.msra.mxu0 %v1251_v55 }
 0x5b9   :  { %v775_v56 = vpop.f32.mrf.mxu0 }
 0x5bb   :  { %v1175_v57 = vpop.f32.mrf.mxu0 }
 0x5bd   :  { %v778_v58 = vpop.f32.mrf.mxu0 }
 0x5be   :  { %v782_v59 = vpack.c.bf16 %v778_v58, %v775_v56 }
 0x5bf   :  { %v1176_v60 = vpop.f32.mrf.mxu0 }
 0x5c0   :  { %953 = vmatmul.mubr.bf16.vlgmr.msra.gmra.mxu0 %v782_v59 }
 0x680   :  { %v1147_v61 = vpop.f32.mrf.mxu0 }
 0x682   :  { %v1148_v63 = vpop.f32.mrf.mxu0 }
 0x683   :  { %v1149_v1 = vadd.f32 %v1148_v63, %v1147_v61 }
 0x684   :  { %v1150_v2 = vpop.f32.mrf.mxu0 }
 0x685   :  { %v955_v3 = vadd.f32 %v1149_v1, %v1040_v62 }
 0x686   :  { %v1151_v5 = vpop.f32.mrf.mxu0 }
 0x687   :  { %961 = vst [vmem:[#allocation8] sm:$0xff] %v955_v3  ;;  %v1152_v6 = vadd.f32 %v1151_v5, %v1150_v2 }
 0x689   :  { %v958_v7 = vadd.f32 %v1152_v6, %v1040_v62 }
 0x68b   :  { %962 = vst [vmem:[#allocation8 + $0x8] sm:$0xff] %v958_v7 }
 0x68c   :  { %1323 = shalt.err (!%p1320_p5)
}
 0x68d   :  { %974 = dma.vmem_to_hbm [thread:$0]  %s969_s14, 256, %s1429_s4, [#allocation4], %s1339_s18, %s1339_s18, %s1340_s19  }
 0x68e   :  { %1336 = dma.done.wait [#allocation4], 256  }
 0x68f   :  { %1337 = vsyncadd [#allocation4], 4294967040 }
 0x690   :  { %978 = vsyncpa [#allocation3], 1 }
 0x691   :  { %979 = vsyncpa [#allocation6], 1 }
 0x692   :  { %980 = vsyncpa [#allocation4], 1 }

</bundles_post_ra>
